<compile_context>
chip_gen: v7x
topology: tpu7x:2x2x1
jax: 0.10.0
libtpu: 0.0.40
codegen_flags: <defaults>
</compile_context>

<pallas_src>
import jax
import jax.numpy as jnp
from jax.experimental import pallas as pl
from jax.experimental.pallas import tpu as pltpu


def _ctg_kernel(x_ref, w_ref, abd_ref, b_ref, o_ref):
    """One (batch, t-block) slab of the graph convolution.

    x_ref:   (Cin, TB*V)      input features; lanes are the flattened (t, v) axis
    w_ref:   (K, Cout, Cin)   1x1-conv weight, split per adjacency kernel k
    abd_ref: (K, TB*V, TB*V)  block-diagonal adjacency: I_TB kron A[k]
    b_ref:   (Cout, TB*V)     bias folded through the adjacency, tiled over t
    o_ref:   (Cout, TB*V)     output features; lanes are the flattened (t, w) axis
    """
    x = x_ref[...]
    k_size = abd_ref.shape[0]

    acc = b_ref[...].astype(jnp.float32)                 # start from folded bias
    for k in range(k_size):                              # static, small K
        wk = w_ref[k]                                    # (Cout, Cin)
        hk = jnp.dot(wk, x, preferred_element_type=jnp.float32)        # (Cout, TB*V)
        acc = acc + jnp.dot(hk, abd_ref[k],
                            preferred_element_type=jnp.float32)        # (Cout, TB*V)
    o_ref[...] = acc.astype(o_ref.dtype)


def _choose_t_block(T, V, max_lanes=256):
    """Largest divisor TB of T with a lane-dense, bounded block width.

    Prefers TB such that TB*V is a multiple of 128 (unmasked loads/stores) and
    TB*V <= max_lanes (bounds the block-diagonal adjacency's zero padding).
    Falls back to the whole T axis (block == full flattened dim, always legal).
    """
    best = None
    for tb in range(1, T + 1):
        if T % tb:
            continue
        lanes = tb * V
        if lanes % 128 == 0 and lanes <= max_lanes:
            best = tb
    return best if best is not None else T


def conv_temporal_graphical(x, A, weight, bias, kernel_size):
    """x: (N, Cin, T, V) f32; A: (K, V, V); weight: (K*Cout, Cin); bias: (K*Cout,)."""
    assert A.shape[0] == kernel_size
    N, Cin, T, V = x.shape
    KC = weight.shape[0]
    K = kernel_size
    Cout = KC // K

    TB = _choose_t_block(T, V)
    n_tb = T // TB
    L = TB * V                                            # lane width per block

    # Free, contiguous reshapes (no transposes): lanes = flattened (t, v).
    x_flat = x.reshape(N, Cin, T * V)
    w3 = weight.reshape(K, Cout, Cin)

    # Block-diagonal adjacency: A_bd[k] = I_TB kron A[k], so that
    # (Cout, TB*V) @ A_bd[k] applies A[k] independently to every t in the block.
    eye = jnp.eye(TB, dtype=A.dtype)
    A_bd = jax.vmap(lambda a_k: jnp.kron(eye, a_k))(A)    # (K, L, L)

    # Bias folded through the adjacency: B[c, w] = sum_k b[k*Cout+c] * sum_v A[k, v, w]
    b_fold = jnp.einsum('kc,kw->cw', bias.reshape(K, Cout), A.sum(axis=1))
    b_tiled = jnp.tile(b_fold, (1, TB)).astype(x.dtype)   # (Cout, L)

    # Explicit VMEM budget: double-buffered I/O blocks + resident operands +
    # live f32 intermediates, with headroom; capped to v7x's 64 MiB physical.
    blk_bytes = 4 * (2 * Cin * L + 2 * Cout * L + K * L * L
                     + K * Cout * Cin + Cout * L + 2 * Cout * L)
    vmem_limit = int(min(64 * 1024 * 1024, max(32 * 1024 * 1024, 2 * blk_bytes)))

    out_flat = pl.pallas_call(
        _ctg_kernel,
        out_shape=jax.ShapeDtypeStruct((N, Cout, T * V), x.dtype),
        grid_spec=pltpu.PrefetchScalarGridSpec(
            num_scalar_prefetch=0,
            grid=(N, n_tb),
            in_specs=[
                pl.BlockSpec((None, Cin, L), lambda n, t: (n, 0, t)),
                pl.BlockSpec((K, Cout, Cin), lambda n, t: (0, 0, 0)),
                pl.BlockSpec((K, L, L), lambda n, t: (0, 0, 0)),
                pl.BlockSpec((Cout, L), lambda n, t: (0, 0)),
            ],
            out_specs=pl.BlockSpec((None, Cout, L), lambda n, t: (n, 0, t)),
        ),
        compiler_params=pltpu.CompilerParams(
            dimension_semantics=("parallel", "parallel"),
            vmem_limit_bytes=vmem_limit),
    )(x_flat, w3, A_bd, b_tiled)

    out = out_flat.reshape(N, Cout, T, V)
    return out, A


def _reference(x, A, weight, bias, kernel_size):
    """Pure-JAX reference mirroring the PyTorch forward."""
    N, Cin, T, V = x.shape
    KC = weight.shape[0]
    Cout = KC // kernel_size
    h = jnp.einsum('oc,nctv->notv', weight, x) + bias[None, :, None, None]
    h = h.reshape(N, kernel_size, Cout, T, V)
    out = jnp.einsum('nkctv,kvw->nctw', h, A)
    return out, A


if __name__ == "__main__":
    # Small shapes consistent with the module's forward.
    N, Cin, Cout, K, T, V = 2, 4, 8, 3, 8, 16

    key = jax.random.PRNGKey(0)
    kx, ka, kw, kb = jax.random.split(key, 4)

    x = jax.random.normal(kx, (N, Cin, T, V), dtype=jnp.float32)
    A = jax.random.normal(ka, (K, V, V), dtype=jnp.float32)

    # Deterministic synthetic parameters (Conv2d(in=Cin, out=K*Cout, kernel=(1,1))).
    fan_in = float(Cin)
    weight = jax.random.normal(kw, (K * Cout, Cin), dtype=jnp.float32) * (fan_in ** -0.5)
    bias = jax.random.normal(kb, (K * Cout,), dtype=jnp.float32) * 0.1

    ctg = jax.jit(conv_temporal_graphical, static_argnums=(4,))
    out, A_out = ctg(x, A, weight, bias, K)
    out = jax.block_until_ready(out)

    ref_out, _ = _reference(x, A, weight, bias, K)
    assert out.shape == (N, Cout, T, V)
    assert jnp.allclose(out, ref_out, atol=1e-4, rtol=1e-4), "mismatch vs reference"

    print("KERNEL_OK")
</pallas_src>

<mosaic_0001>
module attributes {stable_mosaic.version = 11 : i64} {
  func.func @_ctg_kernel(%arg0: i32, %arg1: i32, %arg2: memref<1x4x128xf32, #tpu.memory_space<vmem>>, %arg3: memref<3x8x4xf32, #tpu.memory_space<vmem>>, %arg4: memref<3x128x128xf32, #tpu.memory_space<vmem>>, %arg5: memref<8x128xf32, #tpu.memory_space<vmem>>, %arg6: memref<1x8x128xf32, #tpu.memory_space<vmem>>) attributes {dimension_semantics = [#tpu.dimension_semantics<parallel>, #tpu.dimension_semantics<parallel>], iteration_bounds = array<i64: 2, 1>, scalar_prefetch = 0 : i64, scratch_operands = 0 : i64, tpu.core_type = #tpu.core_type<tc>, window_params = [{transform_indices = @transform_0, window_bounds = array<i64: 1, 4, 128>}, {pipeline_mode = #tpu.pipeline_mode<synchronous>, transform_indices = @transform_1, window_bounds = array<i64: 3, 8, 4>}, {pipeline_mode = #tpu.pipeline_mode<synchronous>, transform_indices = @transform_2, window_bounds = array<i64: 3, 128, 128>}, {pipeline_mode = #tpu.pipeline_mode<synchronous>, transform_indices = @transform_3, window_bounds = array<i64: 8, 128>}, {transform_indices = @transform_4, window_bounds = array<i64: 1, 8, 128>}]} {
    %c0 = arith.constant 0 : index
    %c0_0 = arith.constant 0 : index
    %c0_1 = arith.constant 0 : index
    %0 = vector.load %arg2[%c0, %c0_0, %c0_1] : memref<1x4x128xf32, #tpu.memory_space<vmem>>, vector<1x4x128xf32>
    %1 = vector.shape_cast %0 : vector<1x4x128xf32> to vector<4x128xf32>
    %c0_2 = arith.constant 0 : index
    %c0_3 = arith.constant 0 : index
    %2 = vector.load %arg5[%c0_2, %c0_3] : memref<8x128xf32, #tpu.memory_space<vmem>>, vector<8x128xf32>
    %c0_4 = arith.constant 0 : index
    %c0_5 = arith.constant 0 : index
    %c0_6 = arith.constant 0 : index
    %3 = vector.load %arg3[%c0_4, %c0_5, %c0_6] : memref<3x8x4xf32, #tpu.memory_space<vmem>>, vector<1x8x4xf32>
    %4 = vector.shape_cast %3 : vector<1x8x4xf32> to vector<8x4xf32>
    %cst = arith.constant dense<0.000000e+00> : vector<8x128xf32>
    %5 = tpu.matmul %4, %1, %cst {dimension_numbers = #tpu.dot_dimension_numbers<[1], [0], [0], [1], [0, 0, 1, 1], [], []>} : vector<8x4xf32>, vector<4x128xf32>, vector<8x128xf32> -> vector<8x128xf32>
    %c0_7 = arith.constant 0 : index
    %c0_8 = arith.constant 0 : index
    %c0_9 = arith.constant 0 : index
    %6 = vector.load %arg4[%c0_7, %c0_8, %c0_9] : memref<3x128x128xf32, #tpu.memory_space<vmem>>, vector<1x128x128xf32>
    %7 = vector.shape_cast %6 : vector<1x128x128xf32> to vector<128x128xf32>
    %cst_10 = arith.constant dense<0.000000e+00> : vector<8x128xf32>
    %8 = tpu.matmul %5, %7, %cst_10 {dimension_numbers = #tpu.dot_dimension_numbers<[1], [0], [0], [1], [0, 0, 1, 1], [], []>} : vector<8x128xf32>, vector<128x128xf32>, vector<8x128xf32> -> vector<8x128xf32>
    %9 = arith.addf %2, %8 : vector<8x128xf32>
    %c1 = arith.constant 1 : index
    %c0_11 = arith.constant 0 : index
    %c0_12 = arith.constant 0 : index
    %10 = vector.load %arg3[%c1, %c0_11, %c0_12] : memref<3x8x4xf32, #tpu.memory_space<vmem>>, vector<1x8x4xf32>
    %11 = vector.shape_cast %10 : vector<1x8x4xf32> to vector<8x4xf32>
    %cst_13 = arith.constant dense<0.000000e+00> : vector<8x128xf32>
    %12 = tpu.matmul %11, %1, %cst_13 {dimension_numbers = #tpu.dot_dimension_numbers<[1], [0], [0], [1], [0, 0, 1, 1], [], []>} : vector<8x4xf32>, vector<4x128xf32>, vector<8x128xf32> -> vector<8x128xf32>
    %c1_14 = arith.constant 1 : index
    %c0_15 = arith.constant 0 : index
    %c0_16 = arith.constant 0 : index
    %13 = vector.load %arg4[%c1_14, %c0_15, %c0_16] : memref<3x128x128xf32, #tpu.memory_space<vmem>>, vector<1x128x128xf32>
    %14 = vector.shape_cast %13 : vector<1x128x128xf32> to vector<128x128xf32>
    %cst_17 = arith.constant dense<0.000000e+00> : vector<8x128xf32>
    %15 = tpu.matmul %12, %14, %cst_17 {dimension_numbers = #tpu.dot_dimension_numbers<[1], [0], [0], [1], [0, 0, 1, 1], [], []>} : vector<8x128xf32>, vector<128x128xf32>, vector<8x128xf32> -> vector<8x128xf32>
    %16 = arith.addf %9, %15 : vector<8x128xf32>
    %c2 = arith.constant 2 : index
    %c0_18 = arith.constant 0 : index
    %c0_19 = arith.constant 0 : index
    %17 = vector.load %arg3[%c2, %c0_18, %c0_19] : memref<3x8x4xf32, #tpu.memory_space<vmem>>, vector<1x8x4xf32>
    %18 = vector.shape_cast %17 : vector<1x8x4xf32> to vector<8x4xf32>
    %cst_20 = arith.constant dense<0.000000e+00> : vector<8x128xf32>
    %19 = tpu.matmul %18, %1, %cst_20 {dimension_numbers = #tpu.dot_dimension_numbers<[1], [0], [0], [1], [0, 0, 1, 1], [], []>} : vector<8x4xf32>, vector<4x128xf32>, vector<8x128xf32> -> vector<8x128xf32>
    %c2_21 = arith.constant 2 : index
    %c0_22 = arith.constant 0 : index
    %c0_23 = arith.constant 0 : index
    %20 = vector.load %arg4[%c2_21, %c0_22, %c0_23] : memref<3x128x128xf32, #tpu.memory_space<vmem>>, vector<1x128x128xf32>
    %21 = vector.shape_cast %20 : vector<1x128x128xf32> to vector<128x128xf32>
    %cst_24 = arith.constant dense<0.000000e+00> : vector<8x128xf32>
    %22 = tpu.matmul %19, %21, %cst_24 {dimension_numbers = #tpu.dot_dimension_numbers<[1], [0], [0], [1], [0, 0, 1, 1], [], []>} : vector<8x128xf32>, vector<128x128xf32>, vector<8x128xf32> -> vector<8x128xf32>
    %23 = arith.addf %16, %22 : vector<8x128xf32>
    %c0_25 = arith.constant 0 : index
    %c0_26 = arith.constant 0 : index
    %c0_27 = arith.constant 0 : index
    %24 = vector.load %arg6[%c0_25, %c0_26, %c0_27] : memref<1x8x128xf32, #tpu.memory_space<vmem>>, vector<1x8x128xf32>
    %25 = vector.shape_cast %24 : vector<1x8x128xf32> to vector<8x128xf32>
    %26 = vector.shape_cast %23 : vector<8x128xf32> to vector<1x8x128xf32>
    tpu.vector_store %arg6[%c0_25, %c0_26, %c0_27], %26 {strides = array<i32>} : memref<1x8x128xf32, #tpu.memory_space<vmem>>, vector<1x8x128xf32>,
    return
  }
  func.func @transform_0(%arg0: i32, %arg1: i32) -> (i32, i32, i32) {
    %c0_i32 = arith.constant 0 : i32
    %c0_i32_0 = arith.constant 0 : i32
    return %arg0, %c0_i32, %arg1 : i32, i32, i32
  }
  func.func @transform_1(%arg0: i32, %arg1: i32) -> (i32, i32, i32) {
    %c0_i32 = arith.constant 0 : i32
    %c0_i32_0 = arith.constant 0 : i32
    %c0_i32_1 = arith.constant 0 : i32
    %c0_i32_2 = arith.constant 0 : i32
    return %c0_i32, %c0_i32_0, %c0_i32_1 : i32, i32, i32
  }
  func.func @transform_2(%arg0: i32, %arg1: i32) -> (i32, i32, i32) {
    %c0_i32 = arith.constant 0 : i32
    %c0_i32_0 = arith.constant 0 : i32
    %c0_i32_1 = arith.constant 0 : i32
    %c0_i32_2 = arith.constant 0 : i32
    return %c0_i32, %c0_i32_0, %c0_i32_1 : i32, i32, i32
  }
  func.func @transform_3(%arg0: i32, %arg1: i32) -> (i32, i32) {
    %c0_i32 = arith.constant 0 : i32
    %c0_i32_0 = arith.constant 0 : i32
    %c0_i32_1 = arith.constant 0 : i32
    return %c0_i32, %c0_i32_0 : i32, i32
  }
  func.func @transform_4(%arg0: i32, %arg1: i32) -> (i32, i32, i32) {
    %c0_i32 = arith.constant 0 : i32
    %c0_i32_0 = arith.constant 0 : i32
    return %arg0, %c0_i32, %arg1 : i32, i32, i32
  }
}

</mosaic_0001>

<bundles_post_ra>
// kernel: tile.9
= control target key start
LH: loop header
LB: loop body
LE: loop exit
PB: predicated region body
PF: predicated region fallthrough
CT: control target
= control target key end

     0   :  { %vm4_vm0 = vcmask 1047556   ;;  %s99_s14 = smov 112   ;;  %s100_s19 = smov 80   ;;  %vm6_vm1 = vcmask 130048   ;;  %vm16_vm2 = vcmask 1048448   ;;  %vm26_vm3 = vcmask 917248   ;;  %s196_s0 = inlined_call_operand.vmem [shape: f32[8,8,16], index: 0, kind: input, shape index: {}]   ;;  %s197_s1 = inlined_call_operand.vmem [shape: f32[8,128], index: 1, kind: output, shape index: {}]  }
   0x1   :  { %v78_v0 = vld [vmem:[%s196_s0 + $0x7] ss:$8 sm:$0xf]   ;;  %v82_v3 = vld [vmem:[%s196_s0 + $0x5] ss:$8 sm:$0xf]  }
   0x2   :  { %v79_v1 = vld [vmem:[%s196_s0 + $0x7] ss:$8 sm:$0xf0]   ;;  %v83_v4 = vld [vmem:[%s196_s0 + $0x5] ss:$8 sm:$0xf0]  }
   0x3   :  { %v13_v2 = vsel %vm4_vm0, %v79_v1, %v78_v0  ;;  %v33_v5 = vsel %vm4_vm0, %v83_v4, %v82_v3  ;;  %v80_v6 = vld [vmem:[%s196_s0 + $0x6] ss:$8 sm:$0xf]   ;;  %v84_v9 = vld [vmem:[%s196_s0 + $0x4] ss:$8 sm:$0xf]  }
   0x4   :  { %14 = vrot.lane.b32.xlu0 %v13_v2, %s99_s14  ;;  %v81_v7 = vld [vmem:[%s196_s0 + $0x6] ss:$8 sm:$0xf0]   ;;  %34 = vrot.lane.b32.xlu1 %v33_v5, %s100_s19  ;;  %v85_v10 = vld [vmem:[%s196_s0 + $0x4] ss:$8 sm:$0xf0]  }
   0x5   :  { %v23_v8 = vsel %vm4_vm0, %v81_v7, %v80_v6  ;;  %v86_v11 = vld [vmem:[%s196_s0 + $0x3] ss:$8 sm:$0xf]   ;;  %v43_v12 = vsel %vm4_vm0, %v85_v10, %v84_v9  ;;  %s101_s28 = smov 96   ;;  %s102_s4 = smov 64   ;;  %vm36_vm4 = vcmask 786048  }
   0x6   :  { %v87_v13 = vld [vmem:[%s196_s0 + $0x3] ss:$8 sm:$0xf0]   ;;  %v88_v14 = vld [vmem:[%s196_s0 + $0x2] ss:$8 sm:$0xf]  }
   0x7   :  { %v89_v15 = vld [vmem:[%s196_s0 + $0x2] ss:$8 sm:$0xf0]   ;;  %v53_v16 = vsel %vm4_vm0, %v87_v13, %v86_v11  ;;  %v90_v17 = vld [vmem:[%s196_s0 + $0x1] ss:$8 sm:$0xf]  }
   0x8   :  { %24 = vrot.lane.b32.xlu0 %v23_v8, %s101_s28  ;;  %44 = vrot.lane.b32.xlu1 %v43_v12, %s102_s4  ;;  %v63_v18 = vsel %vm4_vm0, %v89_v15, %v88_v14  ;;  %v91_v19 = vld [vmem:[%s196_s0 + $0x1] ss:$8 sm:$0xf0]   ;;  %v2_v20 = vld [vmem:[%s196_s0] ss:$8 sm:$0xf]  }
   0x9   :  { %v3_v21 = vld [vmem:[%s196_s0] ss:$8 sm:$0xf0]   ;;  %s103_s0 = smov 48   ;;  %s104_s13 = smov 32   ;;  %v73_v23 = vsel %vm4_vm0, %v91_v19, %v90_v17  ;;  %vm46_vm5 = vcmask 654848  }
   0xa   :  { %v5_v22 = vsel %vm4_vm0, %v3_v21, %v2_v20  ;;  %s105_s16 = smov 16   ;;  %vm56_vm6 = vcmask 523648   ;;  %vm66_vm7 = vcmask 392448   ;;  %vm76_vm8 = vcmask 261248  }
   0xb   :  { %7 = vst.msk [vmem:[%s197_s1] sm:$0xff] %vm6_vm1, %v5_v22  }
   0xc   :  { %54 = vrot.lane.b32.xlu0 %v53_v16, %s103_s0  ;;  %64 = vrot.lane.b32.xlu1 %v63_v18, %s104_s13 }
  0x10   :  { %74 = vrot.lane.b32.xlu0 %v73_v23, %s105_s16 }
  0x76   :  { %v15_v24 = vpop.permute.xlu0 %14   ;;  %v35_v25 = vpop.permute.xlu1 %34  }
  0x77   :  { %17 = vst.msk [vmem:[%s197_s1] sm:$0xff] %vm16_vm2, %v15_v24  }
  0x7a   :  { %v25_v26 = vpop.permute.xlu0 %24   ;;  %v45_v27 = vpop.permute.xlu1 %44  }
  0x7b   :  { %27 = vst.msk [vmem:[%s197_s1] sm:$0xff] %vm26_vm3, %v25_v26  }
  0x7c   :  { %37 = vst.msk [vmem:[%s197_s1] sm:$0xff] %vm36_vm4, %v35_v25  }
  0x7d   :  { %47 = vst.msk [vmem:[%s197_s1] sm:$0xff] %vm46_vm5, %v45_v27  }
  0x7e   :  { %v55_v28 = vpop.permute.xlu0 %54   ;;  %v65_v29 = vpop.permute.xlu1 %64  }
  0x7f   :  { %57 = vst.msk [vmem:[%s197_s1] sm:$0xff] %vm56_vm6, %v55_v28  }
  0x80   :  { %67 = vst.msk [vmem:[%s197_s1] sm:$0xff] %vm66_vm7, %v65_v29  }
  0x82   :  { %v75_v30 = vpop.permute.xlu0 %74  }
  0x83   :  { %77 = vst.msk [vmem:[%s197_s1] sm:$0xff] %vm76_vm8, %v75_v30  }

// kernel: conv_temporal_graphical.1
= control target key start
LH: loop header
LB: loop body
LE: loop exit
PB: predicated region body
PF: predicated region fallthrough
CT: control target
= control target key end

     0   :  { %s1174_s15 = smov 0   ;;  %s1176_s16 = smov 0   ;;  %s1417_s0 = inlined_call_operand.vmem [shape: f32[2,4,128], index: 0, kind: input, shape index: {}]   ;;  %s1418_s1 = inlined_call_operand.vmem [shape: f32[3,8,4], index: 1, kind: input, shape index: {}]   ;;  %s1419_s2 = inlined_call_operand.vmem [shape: f32[3,128,128], index: 2, kind: input, shape index: {}]   ;;  %s1420_s3 = inlined_call_operand.vmem [shape: f32[8,128], index: 3, kind: input, shape index: {}]   ;;  %s1421_s4 = inlined_call_operand.vmem [shape: f32[2,8,128], index: 4, kind: output, shape index: {}]  }
   0x1   :  { %s1178_s17 = smov 0  }
   0x2 LB: > { %s26_s18 = sadd.s32 1, %s1140_s16  ;;  %p797_p0 = scmp.ge.s32.totalorder %s1144_s17, 1  ;;  %s1144_s17 = sphi %s1178_s17, %s14_s17   ;;  %s1140_s16 = sphi %s1176_s16, %s1423_s16   ;;  %s1136_s15 = sphi %s1174_s15, %s1422_s15  }
   0x3   : > { %p28_p1 = scmp.ge.s32.totalorder %s26_s18, 2  ;;  %p180_p2 = scmp.lt.s32.totalorder %s1144_s17, 3 }
   0x5   : > { %s1425_s18 = smov (%p28_p1, %s26_s18), 0  ;;  %p181_p3 = pnand %p797_p0, %p180_p2 }
   0x6   : > { %p210_p4 = scmp.lt.s32.totalorder (!%p181_p3), %s1136_s15, 1  ;;  %v1146_v0 = vmov (!%p181_p3), 0.0   ;;  %vm1147_vm0 = vmmov (!%p181_p3), 0   ;;  %v305_v1 = vld [vmem:[%s1419_s2] sm:$0xff] (!%p181_p3)  ;;  %v306_v2 = vld [vmem:[%s1419_s2 + $0x8] sm:$0xff] (!%p181_p3)  ;;  %v1148_v3 = vmov (!%p181_p3), 0.0|0.0  }
   0x7   : > { %184 = sbr.rel (%p181_p3) target bundleno = 694 (0x2b6), region = 36  ;;  %899 = vmatprep.subr.mxu0 (!%p181_p3), %v1146_v0  ;;  %901 = vmatprep.mubr.msk.f32.mxu0 (!%p181_p3), %vm1147_vm0, %v1146_v0  ;;  %vm231_vm1 = vcmask (!%p181_p3), 1043456   ;;  %v226_v4 = vld [vmem:[%s1418_s1] sm:$0xff] (!%p181_p3)  ;;  %vm227_vm2 = vcmask (!%p181_p3), 31744   ;;  %v1020_v5 = vpack.c.bf16 (!%p181_p3), %v306_v2, %v305_v1  ;;  %v307_v7 = vld [vmem:[%s1419_s2 + $0x10] sm:$0xff] (!%p181_p3)  ;;  %v308_v8 = vld [vmem:[%s1419_s2 + $0x18] sm:$0xff] (!%p181_p3) }
   0x8   : > { %1043 = vmatprep.subr.bf16.mxu1 (!%p181_p3), %v1148_v3  ;;  %976 = vmatprep.mubr.msk.f32.mxu1 (!%p181_p3), %vm1147_vm0, %v1146_v0  ;;  %v1023_v9 = vpack.c.bf16 (!%p181_p3), %v308_v8, %v307_v7  ;;  %v309_v10 = vld [vmem:[%s1419_s2 + $0x20] sm:$0xff] (!%p181_p3)  ;;  %v310_v11 = vld [vmem:[%s1419_s2 + $0x28] sm:$0xff] (!%p181_p3)  ;;  %v311_v13 = vld [vmem:[%s1419_s2 + $0x30] sm:$0xff] (!%p181_p3) }
   0x9   : > { %v1026_v12 = vpack.c.bf16 (!%p181_p3), %v310_v11, %v309_v10  ;;  %v312_v14 = vld [vmem:[%s1419_s2 + $0x38] sm:$0xff] (!%p181_p3)  ;;  %v313_v16 = vld [vmem:[%s1419_s2 + $0x40] sm:$0xff] (!%p181_p3)  ;;  %v314_v17 = vld [vmem:[%s1419_s2 + $0x48] sm:$0xff] (!%p181_p3) }
   0xa   : > { %v1029_v15 = vpack.c.bf16 (!%p181_p3), %v312_v14, %v311_v13  ;;  %v1032_v18 = vpack.c.bf16 (!%p181_p3), %v314_v17, %v313_v16  ;;  %v315_v19 = vld [vmem:[%s1419_s2 + $0x50] sm:$0xff] (!%p181_p3)  ;;  %v316_v20 = vld [vmem:[%s1419_s2 + $0x58] sm:$0xff] (!%p181_p3)  ;;  %v317_v22 = vld [vmem:[%s1419_s2 + $0x60] sm:$0xff] (!%p181_p3) }
   0xb   : > { %v1035_v21 = vpack.c.bf16 (!%p181_p3), %v316_v20, %v315_v19  ;;  %v318_v23 = vld [vmem:[%s1419_s2 + $0x68] sm:$0xff] (!%p181_p3)  ;;  %v319_v25 = vld [vmem:[%s1419_s2 + $0x70] sm:$0xff] (!%p181_p3)  ;;  %v320_v26 = vld [vmem:[%s1419_s2 + $0x78] sm:$0xff] (!%p181_p3) }
   0xc   : > { %v1038_v24 = vpack.c.bf16 (!%p181_p3), %v318_v23, %v317_v22  ;;  %v1041_v27 = vpack.c.bf16 (!%p181_p3), %v320_v26, %v319_v25  ;;  %v805_v28 = vld [vmem:[%s1419_s2 + $0x80] sm:$0xff] (!%p181_p3)  ;;  %v806_v29 = vld [vmem:[%s1419_s2 + $0x88] sm:$0xff] (!%p181_p3)  ;;  %v807_v30 = vld [vmem:[%s1419_s2 + $0x90] sm:$0xff] (!%p181_p3) }
   0xd   : > { %v1044_v31 = vpack.c.bf16 (!%p181_p3), %v806_v29, %v805_v28  ;;  %v808_v32 = vld [vmem:[%s1419_s2 + $0x98] sm:$0xff] (!%p181_p3)  ;;  %v809_v34 = vld [vmem:[%s1419_s2 + $0xa0] sm:$0xff] (!%p181_p3)  ;;  %v810_v35 = vld [vmem:[%s1419_s2 + $0xa8] sm:$0xff] (!%p181_p3) }
   0xe   : > { %s1427_s15 = smov (!%p210_p4, %s1136_s15), 1  ;;  %v1047_v33 = vpack.c.bf16 %v808_v32, %v807_v30  ;;  %v1050_v36 = vpack.c.bf16 %v810_v35, %v809_v34  ;;  %v811_v37 = vld [vmem:[%s1419_s2 + $0xb0] sm:$0xff]  ;;  %v812_v38 = vld [vmem:[%s1419_s2 + $0xb8] sm:$0xff]  ;;  %v813_v40 = vld [vmem:[%s1419_s2 + $0xc0] sm:$0xff] }
   0xf   : > { %s798_s23 = sshll.u32 %s1427_s15, 2  ;;  %1045 = vmatpush3.bf16.msra.mxu1 %v1044_v31  ;;  %v1053_v39 = vpack.c.bf16 %v812_v38, %v811_v37  ;;  %v814_v41 = vld [vmem:[%s1419_s2 + $0xc8] sm:$0xff]  ;;  %v815_v43 = vld [vmem:[%s1419_s2 + $0xd0] sm:$0xff]  ;;  %v816_v44 = vld [vmem:[%s1419_s2 + $0xd8] sm:$0xff]  ;;  %s799_s13 = sshll.u32 %s1427_s15, 3 }
  0x10   : > { %s216_s26 = scalar_lea.vmem %s1417_s0, %s798_s23  ;;  %1046 = vmatprep.subr.bf16.mxu1 %v1148_v3  ;;  %v1056_v42 = vpack.c.bf16 %v814_v41, %v813_v40  ;;  %v1059_v45 = vpack.c.bf16 %v816_v44, %v815_v43  ;;  %v817_v46 = vld [vmem:[%s1419_s2 + $0xe0] sm:$0xff]  ;;  %v818_v47 = vld [vmem:[%s1419_s2 + $0xe8] sm:$0xff]  ;;  %v821_v52 = vld [vmem:[%s1418_s1 + $0x10] sm:$0xff]  ;;  %s223_s20 = scalar_lea.vmem %s1421_s4, %s799_s13 }
  0x11   : > { %v1213_v6 = vld [vmem:[%s216_s26] sm:$0xf]  ;;  %v1062_v48 = vpack.c.bf16 %v818_v47, %v817_v46  ;;  %v802_v51 = vld [vmem:[%s1418_s1 + $0x8] sm:$0xff]  ;;  %v819_v53 = vld [vmem:[%s1419_s2 + $0xf0] sm:$0xff] }
  0x12   : > { %900 = vmatpush3.msk.msra.mxu0 %vm231_vm1, %v1213_v6  ;;  %v820_v54 = vld [vmem:[%s1419_s2 + $0xf8] sm:$0xff]  ;;  %v824_v56 = vld [vmem:[%s1419_s2 + $0x100] sm:$0xff]  ;;  %v825_v57 = vld [vmem:[%s1419_s2 + $0x108] sm:$0xff] }
  0x13   : > { %902 = vmatmul.mubr.msk.f32.vlgmr.msra.gmra.mrb[0].mxu0 %vm227_vm2, %v226_v4  ;;  %1019 = vmatprep.subr.bf16.mxu0 %v1148_v3  ;;  %v1065_v55 = vpack.c.bf16 %v820_v54, %v819_v53  ;;  %v1068_v60 = vpack.c.bf16 %v825_v57, %v824_v56  ;;  %v826_v61 = vld [vmem:[%s1419_s2 + $0x110] sm:$0xff]  ;;  %v827_v62 = vld [vmem:[%s1419_s2 + $0x118] sm:$0xff]  ;;  %v828_v4 = vld [vmem:[%s1419_s2 + $0x120] sm:$0xff] }
  0x14   : > { %1021 = vmatpush3.bf16.msra.mxu0 %v1020_v5  ;;  %936 = vmatprep.mubr.msk.f32.mxu0 %vm1147_vm0, %v1146_v0  ;;  %v1071_v2 = vpack.c.bf16 %v827_v62, %v826_v61  ;;  %v829_v5 = vld [vmem:[%s1419_s2 + $0x128] sm:$0xff]  ;;  %v832_v11 = vld [vmem:[%s1419_s2 + $0x140] sm:$0xff]  ;;  %v834_v14 = vld [vmem:[%s1419_s2 + $0x150] sm:$0xff] }
  0x15   : > { %1022 = vmatprep.subr.bf16.mxu0 %v1148_v3  ;;  %1048 = vmatpush3.bf16.msra.mxu1 %v1047_v33  ;;  %v1074_v8 = vpack.c.bf16 %v829_v5, %v828_v4  ;;  %v836_v17 = vld [vmem:[%s1419_s2 + $0x160] sm:$0xff]  ;;  %v838_v20 = vld [vmem:[%s1419_s2 + $0x170] sm:$0xff] }
  0x16   : > { %1049 = vmatprep.subr.bf16.mxu1 %v1148_v3  ;;  %v225_v23 = vld [vmem:[%s1420_s3] sm:$0xff] }
  0x18   : > { %1024 = vmatpush3.bf16.msra.mxu0 %v1023_v9  ;;  %v831_v9 = vld [vmem:[%s1419_s2 + $0x138] sm:$0xff] }
  0x19   : > { %1025 = vmatprep.subr.bf16.mxu0 %v1148_v3  ;;  %1051 = vmatpush3.bf16.msra.mxu1 %v1050_v36 }
  0x1a   : > { %1052 = vmatprep.subr.bf16.mxu1 %v1148_v3 }
  0x1c   : > { %1027 = vmatpush3.bf16.msra.mxu0 %v1026_v12  ;;  %v833_v12 = vld [vmem:[%s1419_s2 + $0x148] sm:$0xff] }
  0x1d   : > { %1028 = vmatprep.subr.bf16.mxu0 %v1148_v3  ;;  %1054 = vmatpush3.bf16.msra.mxu1 %v1053_v39  ;;  %v1080_v13 = vpack.c.bf16 %v833_v12, %v832_v11 }
  0x1e   : > { %1055 = vmatprep.subr.bf16.mxu1 %v1148_v3 }
  0x20   : > { %1030 = vmatpush3.bf16.msra.mxu0 %v1029_v15  ;;  %v835_v15 = vld [vmem:[%s1419_s2 + $0x158] sm:$0xff] }
  0x21   : > { %1031 = vmatprep.subr.bf16.mxu0 %v1148_v3  ;;  %1057 = vmatpush3.bf16.msra.mxu1 %v1056_v42  ;;  %v1083_v16 = vpack.c.bf16 %v835_v15, %v834_v14 }
  0x22   : > { %1058 = vmatprep.subr.bf16.mxu1 %v1148_v3 }
  0x24   : > { %1033 = vmatpush3.bf16.msra.mxu0 %v1032_v18  ;;  %v837_v18 = vld [vmem:[%s1419_s2 + $0x168] sm:$0xff] }
  0x25   : > { %1034 = vmatprep.subr.bf16.mxu0 %v1148_v3  ;;  %1060 = vmatpush3.bf16.msra.mxu1 %v1059_v45  ;;  %v1086_v19 = vpack.c.bf16 %v837_v18, %v836_v17 }
  0x26   : > { %1061 = vmatprep.subr.bf16.mxu1 %v1148_v3 }
  0x28   : > { %1036 = vmatpush3.bf16.msra.mxu0 %v1035_v21  ;;  %v839_v21 = vld [vmem:[%s1419_s2 + $0x178] sm:$0xff] }
  0x29   : > { %1037 = vmatprep.subr.bf16.mxu0 %v1148_v3  ;;  %1063 = vmatpush3.bf16.msra.mxu1 %v1062_v48  ;;  %v1089_v22 = vpack.c.bf16 %v839_v21, %v838_v20 }
  0x2a   : > { %1064 = vmatprep.subr.bf16.mxu1 %v1148_v3 }
  0x2c   : > { %1039 = vmatpush3.bf16.msra.mxu0 %v1038_v24 }
  0x2d   : > { %1040 = vmatprep.subr.bf16.mxu0 %v1148_v3  ;;  %1066 = vmatpush3.bf16.msra.mxu1 %v1065_v55 }
  0x2e   : > { %1067 = vmatprep.subr.bf16.mxu1 %v1148_v3 }
  0x30   : > { %1042 = vmatpush3.bf16.msra.mxu0 %v1041_v27 }
  0x31   : > { %939 = vmatprep.subr.mxu0 %v1146_v0 }
  0xe6   : > { %v301_v49 = vpop.f32.mrb[0].mxu0 }
  0xe7   : > { %v903_v50 = vpop.f32.mrb[1].mxu0  ;;  %937 = vmatmul.mubr.f32.vlgmr.msra.gmra.mrb[2].mxu0 %v301_v49 }
  0xe8   : > { %940 = vmatpush3.msk.msra.mxu0 %vm231_vm1, %v1213_v6  ;;  %941 = vmatprep.mubr.msk.f32.mxu0 %vm1147_vm0, %v1146_v0 }
  0xe9   : > { %979 = vmatprep.subr.mxu0 %v1146_v0 }
  0xeb   : > { %942 = vmatmul.mubr.msk.f32.vlgmr.msra.gmra.mrb[4].mxu0 %vm227_vm2, %v802_v51 }
  0xec   : > { %980 = vmatpush3.msk.msra.mxu0 %vm231_vm1, %v1213_v6  ;;  %981 = vmatprep.mubr.msk.f32.mxu0 %vm1147_vm0, %v1146_v0 }
  0xef   : > { %982 = vmatmul.mubr.msk.f32.vlgmr.msra.gmra.mrb[6].mxu0 %vm227_vm2, %v821_v52 }
 0x1ba   : > { %v387_v58 = vpop.f32.mrb[2].mxu0 }
 0x1bb   : > { %v938_v59 = vpop.f32.mrb[3].mxu0  ;;  %v391_v24 = vadd.f32 %v387_v58, %v225_v23 }
 0x1be   : > { %v463_v63 = vpop.f32.mrb[4].mxu0 }
 0x1bf   : > { %v943_v1 = vpop.f32.mrb[5].mxu0  ;;  %977 = vmatmul.mubr.f32.vlgmr.msra.gmra.mrb[0].mxu1 %v463_v63 }
 0x1c0   : > { %1069 = vmatpush3.bf16.msra.mxu1 %v1068_v60  ;;  %1016 = vmatprep.mubr.msk.f32.mxu1 %vm1147_vm0, %v1146_v0  ;;  %v830_v0 = vld [vmem:[%s1419_s2 + $0x130] sm:$0xff] }
 0x1c1   : > { %1070 = vmatprep.subr.bf16.mxu1 %v1148_v3  ;;  %v1077_v10 = vpack.c.bf16 %v831_v9, %v830_v0 }
 0x1c2   : > { %v626_v6 = vpop.f32.mrb[6].mxu0 }
 0x1c3   : > { %v983_v7 = vpop.f32.mrb[7].mxu0 }
 0x1c4   : > { %1072 = vmatpush3.bf16.msra.mxu1 %v1071_v2 }
 0x1c5   : > { %1073 = vmatprep.subr.bf16.mxu1 %v1148_v3 }
 0x1c8   : > { %1075 = vmatpush3.bf16.msra.mxu1 %v1074_v8 }
 0x1c9   : > { %1076 = vmatprep.subr.bf16.mxu1 %v1148_v3 }
 0x1cc   : > { %1078 = vmatpush3.bf16.msra.mxu1 %v1077_v10 }
 0x1cd   : > { %1079 = vmatprep.subr.bf16.mxu1 %v1148_v3 }
 0x1d0   : > { %1081 = vmatpush3.bf16.msra.mxu1 %v1080_v13 }
 0x1d1   : > { %1082 = vmatprep.subr.bf16.mxu1 %v1148_v3 }
 0x1d4   : > { %1084 = vmatpush3.bf16.msra.mxu1 %v1083_v16 }
 0x1d5   : > { %1085 = vmatprep.subr.bf16.mxu1 %v1148_v3 }
 0x1d8   : > { %1087 = vmatpush3.bf16.msra.mxu1 %v1086_v19 }
 0x1d9   : > { %1088 = vmatprep.subr.bf16.mxu1 %v1148_v3 }
 0x1dc   : > { %1090 = vmatpush3.bf16.msra.mxu1 %v1089_v22 }
 0x1df   : > { %1017 = vmatmul.mubr.f32.vlgmr.msra.gmra.mrb[0].mxu1 %v626_v6 }
 0x2b2   : > { %v713_v25 = vpop.f32.mrb[0].mxu1 }
 0x2b3   : > { %v1092_v26 = vadd.f32 %v713_v25, %v391_v24  ;;  %v1018_v27 = vpop.f32.mrb[1].mxu1 }
 0x2b5   : > { %718 = vst [vmem:[%s223_s20] sm:$0xff] %v1092_v26 }
 0x2b6 PF: > { %s14_s17 = sadd.s32 1, %s1144_s17   ;;  %s1422_s15 = smov %s1140_s16 }
 0x2b7   : > { %p11_p5 = scmp.ge.s32.totalorder %s14_s17, 4   ;;  %s1423_s16 = smov %s1425_s18 }
 0x2b9   :  { %13 = sbr.rel (!%p11_p5) target bundleno = 2 (0x2), region = 70 }

</bundles_post_ra>
